<compile_context>
chip_gen: v7x
topology: tpu7x:2x2x1
jax: 0.10.0
libtpu: 0.0.40
codegen_flags: <defaults>
</compile_context>

<pallas_src>
import math

import jax
import jax.numpy as jnp
from jax.experimental import pallas as pl
from jax.experimental.pallas import tpu as pltpu


_KERNEL_COEFFS = {
    2: [1.0, -2.0, 1.0],
    4: [-1 / 12, 4 / 3, -5 / 2, 4 / 3, -1 / 12],
    6: [1 / 90, -3 / 20, 3 / 2, -49 / 18, 3 / 2, -3 / 20, 1 / 90],
    8: [-1 / 560, 8 / 315, -1 / 5, 8 / 5, -205 / 72, 8 / 5, -1 / 5, 8 / 315, -1 / 560],
}


def _choose_row_tile(rc: int, lp: int, r: int) -> int:
    """Largest multiple-of-8 row tile whose double-buffered f32 blocks fit a conservative budget."""
    # double-buffered blocks: input (lp) + output (lp) + two boundary-fix blocks (2*r)
    per_row_bytes = 2 * 4 * (2 * lp + 2 * r)
    budget = 8 * 1024 * 1024            # keeps block VMEM well under v7x's 64 MiB physical
    tile = budget // per_row_bytes
    tile = max(8, min(2048, (tile // 8) * 8))
    tile = min(tile, max(8, -(-rc // 8) * 8))   # never bigger than the 8-padded row count
    return tile


def _make_fd_kernel(taps, R: int, L: int, Lp: int):
    """Builds the Pallas kernel body; taps are baked as Python float constants."""

    def kernel(x_ref, sfix_ref, efix_ref, o_ref):
        # Single lane-dense load of the row tile; shifted operands come from XLU rolls.
        x = x_ref[...]
        acc = taps[R] * x
        for s in range(1, R + 1):
            # x[:, j + s] == roll(x, -s) == roll(x, Lp - s) (keep shift non-negative)
            # x[:, j - s] == roll(x, +s); symmetric taps -> one multiply per offset pair.
            pair = pltpu.roll(x, Lp - s, axis=1) + pltpu.roll(x, s, axis=1)
            acc = acc + taps[R + s] * pair
        o_ref[...] = acc.astype(o_ref.dtype)
        # Patch the 2R boundary columns (the only ones that see the Taylor pads / roll wraparound).
        o_ref[:, 0:R] = sfix_ref[...].astype(o_ref.dtype)
        o_ref[:, L - R:L] = efix_ref[...].astype(o_ref.dtype)

    return kernel


def _depthwise_fd_conv(x2d, start_fix, end_fix, taps, R: int):
    """x2d: (B*C, L) f32; start_fix/end_fix: (B*C, R) exact first/last-R output columns."""
    RC, L = x2d.shape
    Lp = ((L + 127) // 128) * 128                      # lane-dense time extent
    tile_r = _choose_row_tile(RC, Lp, R)
    RCp = -(-RC // tile_r) * tile_r                    # rows padded to a multiple of the tile

    x_p = jnp.pad(x2d, ((0, RCp - RC), (0, Lp - L)))
    sf_p = jnp.pad(start_fix, ((0, RCp - RC), (0, 0)))
    ef_p = jnp.pad(end_fix, ((0, RCp - RC), (0, 0)))

    kernel = _make_fd_kernel(taps, R, L, Lp)
    out = pl.pallas_call(
        kernel,
        out_shape=jax.ShapeDtypeStruct((RCp, Lp), x2d.dtype),
        grid=(RCp // tile_r,),
        in_specs=[
            pl.BlockSpec((tile_r, Lp), lambda i: (i, 0)),   # signal tile (lane-dense)
            pl.BlockSpec((tile_r, R), lambda i: (i, 0)),    # first-R output columns
            pl.BlockSpec((tile_r, R), lambda i: (i, 0)),    # last-R output columns
        ],
        out_specs=pl.BlockSpec((tile_r, Lp), lambda i: (i, 0)),
        compiler_params=pltpu.CompilerParams(
            dimension_semantics=("parallel",),              # megacore sharding on v7x
            vmem_limit_bytes=48 * 1024 * 1024,
        ),
    )(x_p, sf_p, ef_p)
    return out[:RC, :L]


class CentralFDConv1D:
    """JAX/Pallas port of the PyTorch module. Input x is (batch, 3, length) float32."""

    def __init__(self, stencil_radius: int, h: float = 0.01):
        self.stencil_radius = stencil_radius
        self.kernel_size = 2 * stencil_radius + 1
        # Fixed FD coefficients / h^2, shared by the 3 channels (identical to the depthwise
        # groups=3 Conv1d with repeated weights in the PyTorch module).
        self.taps = tuple(float(c) / (h * h) for c in _KERNEL_COEFFS[2 * stencil_radius])
        self.kernel_weights = jnp.asarray(self.taps, jnp.float32)
        fwd, bwd = [], []
        for k in range(1, stencil_radius + 1):
            fe, be = [], []
            for m in range(1, stencil_radius + 1):
                fe.append(math.pow(k, m) / math.factorial(m))
                be.append(math.pow(-k, m) / math.factorial(m))
            fwd.append(fe)
            bwd.append(be)
        self.forwardMatrix = jnp.linalg.inv(jnp.asarray(fwd, jnp.float32))  # (R, R)
        self.backwardMatrix = jnp.asarray(bwd, jnp.float32)                 # (R, R)

    # --- Taylor-expansion boundary padding (tiny (B, C, R) arrays; plain JAX glue) ---
    def taylor_pads(self, x):
        R = self.stencil_radius
        x_start = x[:, :, 0]                                   # (B, C)
        d_start = x[:, :, 1:R + 1] - x_start[..., None]        # (B, C, R)
        t = jnp.einsum("ij,bcj->bci", self.forwardMatrix, d_start)
        pad_start = x_start[..., None] + jnp.einsum("ij,bcj->bci", self.backwardMatrix, t)
        pad_start = pad_start[..., ::-1]
        x_end = x[:, :, -1]                                    # (B, C)
        x_left = x[:, :, -R - 1:-1][..., ::-1]                 # (B, C, R), nearest-to-end first
        d_end = x_left - x_end[..., None]
        t = jnp.einsum("ij,bcj->bci", self.forwardMatrix, d_end)
        pad_end = x_end[..., None] + jnp.einsum("ij,bcj->bci", self.backwardMatrix, t)
        return pad_start, pad_end

    def pad_inputs(self, x):
        """Materialized padded signal (reference / parity with torch padInputs only)."""
        ps, pe = self.taylor_pads(x)
        return jnp.concatenate([ps, x, pe], axis=2)

    def __call__(self, x):
        B, C, L = x.shape
        R = self.stencil_radius
        K = self.kernel_size
        if L < 2 * R:
            raise ValueError(f"signal length {L} must be >= 2*stencil_radius ({2 * R})")

        ps, pe = self.taylor_pads(x)                            # (B, C, R) each
        w = self.kernel_weights

        # Exact first/last R output columns (the only ones touching the pads), in plain JAX.
        win_s = jnp.concatenate([ps, x[:, :, :2 * R]], axis=-1)         # xp[:, :, 0:3R]
        win_e = jnp.concatenate([x[:, :, L - 2 * R:], pe], axis=-1)     # xp[:, :, L-R:L+2R]
        start_fix = jnp.stack(
            [jnp.einsum("k,bck->bc", w, win_s[:, :, j:j + K]) for j in range(R)], axis=-1)
        end_fix = jnp.stack(
            [jnp.einsum("k,bck->bc", w, win_e[:, :, j:j + K]) for j in range(R)], axis=-1)

        out2d = _depthwise_fd_conv(
            x.reshape(B * C, L),
            start_fix.reshape(B * C, R),
            end_fix.reshape(B * C, R),
            self.taps, R)
        return out2d.reshape(B, C, L)


if __name__ == "__main__":
    key = jax.random.PRNGKey(0)
    # NCL layout, C must be 3 (module hard-codes in_channels=3, groups=3).
    x = jax.random.normal(key, (2, 3, 16), dtype=jnp.float32)

    mod = CentralFDConv1D(stencil_radius=3, h=0.01)
    out = jax.block_until_ready(mod(x))

    # Reference: materialized Taylor padding + plain-JAX correlation (mirrors torch Conv1d depthwise).
    xp = mod.pad_inputs(x)
    K, L = mod.kernel_size, x.shape[-1]
    ref = sum(mod.kernel_weights[k] * xp[:, :, k:k + L] for k in range(K))

    assert out.shape == x.shape, (out.shape, x.shape)
    assert jnp.allclose(out, ref, rtol=1e-4, atol=1e-1), float(jnp.max(jnp.abs(out - ref)))
    print("KERNEL_OK")
</pallas_src>

<mosaic_0001>
module attributes {stable_mosaic.version = 11 : i64} {
  func.func @kernel(%arg0: i32, %arg1: memref<8x128xf32, #tpu.memory_space<vmem>>, %arg2: memref<8x3xf32, #tpu.memory_space<vmem>>, %arg3: memref<8x3xf32, #tpu.memory_space<vmem>>, %arg4: memref<8x128xf32, #tpu.memory_space<vmem>>) attributes {dimension_semantics = [#tpu.dimension_semantics<parallel>], iteration_bounds = array<i64: 1>, scalar_prefetch = 0 : i64, scratch_operands = 0 : i64, tpu.core_type = #tpu.core_type<tc>, window_params = [{transform_indices = @transform_0, window_bounds = array<i64: 8, 128>}, {transform_indices = @transform_1, window_bounds = array<i64: 8, 3>}, {transform_indices = @transform_2, window_bounds = array<i64: 8, 3>}, {transform_indices = @transform_3, window_bounds = array<i64: 8, 128>}]} {
    %c0 = arith.constant 0 : index
    %c0_0 = arith.constant 0 : index
    %0 = vector.load %arg1[%c0, %c0_0] : memref<8x128xf32, #tpu.memory_space<vmem>>, vector<8x128xf32>
    %cst = arith.constant -27222.2227 : f32
    %1 = vector.broadcast %cst : f32 to vector<8x128xf32>
    %2 = arith.mulf %1, %0 : vector<8x128xf32>
    %c127_i32 = arith.constant 127 : i32
    %3 = tpu.dynamic_rotate %0 by %c127_i32 dim 1 : vector<8x128xf32>, i32 -> vector<8x128xf32>
    %c1_i32 = arith.constant 1 : i32
    %4 = tpu.dynamic_rotate %0 by %c1_i32 dim 1 : vector<8x128xf32>, i32 -> vector<8x128xf32>
    %5 = arith.addf %3, %4 : vector<8x128xf32>
    %cst_1 = arith.constant 1.500000e+04 : f32
    %6 = vector.broadcast %cst_1 : f32 to vector<8x128xf32>
    %7 = arith.mulf %6, %5 : vector<8x128xf32>
    %8 = arith.addf %2, %7 : vector<8x128xf32>
    %c126_i32 = arith.constant 126 : i32
    %9 = tpu.dynamic_rotate %0 by %c126_i32 dim 1 : vector<8x128xf32>, i32 -> vector<8x128xf32>
    %c2_i32 = arith.constant 2 : i32
    %10 = tpu.dynamic_rotate %0 by %c2_i32 dim 1 : vector<8x128xf32>, i32 -> vector<8x128xf32>
    %11 = arith.addf %9, %10 : vector<8x128xf32>
    %cst_2 = arith.constant -1.500000e+03 : f32
    %12 = vector.broadcast %cst_2 : f32 to vector<8x128xf32>
    %13 = arith.mulf %12, %11 : vector<8x128xf32>
    %14 = arith.addf %8, %13 : vector<8x128xf32>
    %c125_i32 = arith.constant 125 : i32
    %15 = tpu.dynamic_rotate %0 by %c125_i32 dim 1 : vector<8x128xf32>, i32 -> vector<8x128xf32>
    %c3_i32 = arith.constant 3 : i32
    %16 = tpu.dynamic_rotate %0 by %c3_i32 dim 1 : vector<8x128xf32>, i32 -> vector<8x128xf32>
    %17 = arith.addf %15, %16 : vector<8x128xf32>
    %cst_3 = arith.constant 111.111115 : f32
    %18 = vector.broadcast %cst_3 : f32 to vector<8x128xf32>
    %19 = arith.mulf %18, %17 : vector<8x128xf32>
    %20 = arith.addf %14, %19 : vector<8x128xf32>
    %c0_4 = arith.constant 0 : index
    %c0_5 = arith.constant 0 : index
    %21 = vector.load %arg4[%c0_4, %c0_5] : memref<8x128xf32, #tpu.memory_space<vmem>>, vector<8x128xf32>
    tpu.vector_store %arg4[%c0_4, %c0_5], %20 {strides = array<i32>} : memref<8x128xf32, #tpu.memory_space<vmem>>, vector<8x128xf32>,
    %c0_6 = arith.constant 0 : index
    %c0_7 = arith.constant 0 : index
    %22 = vector.load %arg2[%c0_6, %c0_7] : memref<8x3xf32, #tpu.memory_space<vmem>>, vector<8x3xf32>
    %c0_8 = arith.constant 0 : index
    %c0_9 = arith.constant 0 : index
    %23 = vector.load %arg4[%c0_8, %c0_9] : memref<8x128xf32, #tpu.memory_space<vmem>>, vector<8x3xf32>
    tpu.vector_store %arg4[%c0_8, %c0_9], %22 {strides = array<i32>} : memref<8x128xf32, #tpu.memory_space<vmem>>, vector<8x3xf32>,
    %c0_10 = arith.constant 0 : index
    %c0_11 = arith.constant 0 : index
    %24 = vector.load %arg3[%c0_10, %c0_11] : memref<8x3xf32, #tpu.memory_space<vmem>>, vector<8x3xf32>
    %c0_12 = arith.constant 0 : index
    %c13 = arith.constant 13 : index
    %25 = vector.load %arg4[%c0_12, %c13] : memref<8x128xf32, #tpu.memory_space<vmem>>, vector<8x3xf32>
    tpu.vector_store %arg4[%c0_12, %c13], %24 {strides = array<i32>} : memref<8x128xf32, #tpu.memory_space<vmem>>, vector<8x3xf32>,
    return
  }
  func.func @transform_0(%arg0: i32) -> (i32, i32) {
    %c0_i32 = arith.constant 0 : i32
    %c0_i32_0 = arith.constant 0 : i32
    return %arg0, %c0_i32 : i32, i32
  }
  func.func @transform_1(%arg0: i32) -> (i32, i32) {
    %c0_i32 = arith.constant 0 : i32
    %c0_i32_0 = arith.constant 0 : i32
    return %arg0, %c0_i32 : i32, i32
  }
  func.func @transform_2(%arg0: i32) -> (i32, i32) {
    %c0_i32 = arith.constant 0 : i32
    %c0_i32_0 = arith.constant 0 : i32
    return %arg0, %c0_i32 : i32, i32
  }
  func.func @transform_3(%arg0: i32) -> (i32, i32) {
    %c0_i32 = arith.constant 0 : i32
    %c0_i32_0 = arith.constant 0 : i32
    return %arg0, %c0_i32 : i32, i32
  }
}

</mosaic_0001>

<bundles_post_ra>
// kernel: tpu_custom_call.1
= control target key start
LH: loop header
LB: loop body
LE: loop exit
PB: predicated region body
PF: predicated region fallthrough
CT: control target
= control target key end

     0   :  { %s144_s0 = inlined_call_operand.vmem [shape: f32[8,128], index: 0, kind: input, shape index: {}]   ;;  %s145_s1 = inlined_call_operand.vmem [shape: f32[8,3], index: 1, kind: input, shape index: {}]   ;;  %s146_s2 = inlined_call_operand.vmem [shape: f32[8,3], index: 2, kind: input, shape index: {}]   ;;  %s147_s3 = inlined_call_operand.hbm [shape: f32[8,128], index: 3, kind: output, shape index: {}]  }
   0x1   :  { %v15_v0 = vld [vmem:[%s144_s0] sm:$0xff] }
   0x2   :  { %8 = vsyncpa [#allocation3], 0  ;;  %s95_s14 = smov 126   ;;  %s96_s15 = smov 127   ;;  %v42_v1 = vld [vmem:[%s146_s2] sm:$0xff]  ;;  %vm40_vm0 = vcmask 23552  }
   0x3   :  { %24 = vrot.lane.b32.xlu1 %v15_v0, %s95_s14  ;;  %17 = vrot.lane.b32.xlu0 %v15_v0, %s96_s15  ;;  %s97_s16 = smov 2   ;;  %s98_s17 = smov 1   ;;  %v16_v7 = vmul.f32 -27222.223, %v15_v0  ;;  %v39_v18 = vld [vmem:[%s145_s1] sm:$0xff]  ;;  %vm47_vm1 = vcmask 130152  }
   0x4   :  { %s99_s18 = smov 3   ;;  %s100_s19 = smov 125  }
   0x5   :  { %s101_s22 = smov 13   ;;  %s102_s0 = smov [#allocation2]  }
   0x6   :  { %s55_s23 = sshll.u32 %s102_s0, 4  ;;  %s56_s23 = int_to_ptr.vmem [resolvable:$true] %s55_s23 }
   0x7   :  { %26 = vrot.lane.b32.xlu1 %v15_v0, %s97_s16  ;;  %19 = vrot.lane.b32.xlu0 %v15_v0, %s98_s17  ;;  %s71_s25 = scalar_lea.vmem %s56_s23, 128  ;;  %p76_p1 = scmp.lt.s32.totalorder %s56_s23, %s56_s23 }
   0x8   :  { %p72_p0 = scmp.ne.s32.totalorder %s56_s23, %s71_s25  ;;  %p77_p2 = scmp.lt.s32.totalorder %s71_s25, %s71_s25 }
   0xa   :  { %p78_p3 = por %p77_p2, %p76_p1 }
   0xb   :  { %33 = vrot.lane.b32.xlu1 %v15_v0, %s99_s18  ;;  %31 = vrot.lane.b32.xlu0 %v15_v0, %s100_s19 }
   0xc   :  { %p79_p4 = pnand %p78_p3, %p72_p0 }
   0xf   :  { %44 = vrot.lane.b32.xlu0 %v42_v1, %s101_s22 }
  0x75   :  { %v25_v2 = vpop.permute.xlu1 %24  ;;  %v18_v3 = vpop.permute.xlu0 %17 }
  0x79   :  { %v27_v4 = vpop.permute.xlu1 %26  ;;  %v20_v5 = vpop.permute.xlu0 %19 }
  0x7a   :  { %v28_v6 = vadd.f32 %v27_v4, %v25_v2  ;;  %v21_v8 = vadd.f32 %v20_v5, %v18_v3 }
  0x7c   :  { %v22_v9 = vmul.f32 15000.0, %v21_v8  ;;  %v29_v12 = vmul.f32 -1500.0, %v28_v6 }
  0x7d   :  { %v34_v10 = vpop.permute.xlu1 %33  ;;  %v32_v11 = vpop.permute.xlu0 %31 }
  0x7e   :  { %v23_v13 = vadd.f32 %v22_v9, %v16_v7  ;;  %v35_v14 = vadd.f32 %v34_v10, %v32_v11 }
  0x80   :  { %v30_v15 = vadd.f32 %v29_v12, %v23_v13  ;;  %v36_v16 = vmul.f32 111.111115, %v35_v14 }
  0x81   :  { %v45_v19 = vpop.permute.xlu0 %44 }
  0x82   :  { %v37_v17 = vadd.f32 %v36_v16, %v30_v15 }
  0x84   :  { %38 = vst [vmem:[#allocation2] sm:$0xff] %v37_v17 }
  0x85   :  { %41 = vst.msk [vmem:[#allocation2] sm:$0xff] %vm40_vm0, %v39_v18 }
  0x86   :  { %48 = vst.msk [vmem:[#allocation2] sm:$0xff] %vm47_vm1, %v45_v19 }
  0x87   :  { %82 = shalt.err (!%p79_p4)
}
  0x88   :  { %s83_s28 = scalar_lea.hbm %s147_s3, 128 }
  0x89   :  { %p84_p5 = scmp.ne.s32.totalorder %s147_s3, %s83_s28  ;;  %p87_p6 = scmp.lt.u32.totalorder %s83_s28, %s147_s3 }
  0x8b   :  { %p89_p7 = pnand %p87_p6, %p84_p5 }
  0x8d   :  { %92 = shalt.err (!%p89_p7)
}
  0x8e   :  { %58 = dma.vmem_to_hbm [thread:$0]  %s56_s23, 128, %s147_s3, [#allocation3]  }
  0x8f   :  { %93 = dma.done.wait [#allocation3], 128  }
  0x90   :  { %94 = vsyncadd [#allocation3], 4294967168 }
  0x91   :  { %62 = vsyncpa [#allocation3], 1 }

</bundles_post_ra>
